<compile_context>
chip_gen: v6e
topology: v6e:2x2x1
jax: 0.10.0
libtpu: 0.0.40
codegen_flags: <defaults>
</compile_context>

<pallas_src>
import itertools
from math import comb

import numpy as np
import jax
import jax.numpy as jnp
from jax.experimental import pallas as pl
from jax.experimental.pallas import tpu as pltpu


def _ceil_to(x, m):
    return -(-x // m) * m


def poly_features(xu, degree):
    """Pure-JAX reference: sklearn PolynomialFeatures(degree, include_bias=False)
    ordering (deg 1..degree, combinations_with_replacement of column indices)."""
    d = xu.shape[-1]
    cols = []
    for deg in range(1, degree + 1):
        for combo in itertools.combinations_with_replacement(range(d), deg):
            c = xu[:, combo[0]]
            for idx in combo[1:]:
                c = c * xu[:, idx]
            cols.append(c)
    return jnp.stack(cols, axis=-1)


def _logtrans_kernel(xu_ref, s_ref, fill_ref, coefT_ref, matT_ref,
                     tile_ref, rep_ref, logmat_flat_ref, o_ref):
    # xu_ref:          (tm, d_pad)          raw input tile (obs, act), zero-padded cols
    # s_ref:           (degree, d_pad, F_pad) selection matrices (0/1)
    # fill_ref:        (degree, F_pad)      1.0 where a factor slot is unused
    # coefT_ref:       (F_pad, K)           coef^T, zero-padded rows
    # matT_ref:        (K, K)               exp(logmat).T
    # tile_ref:        (K, K*K)             tile(eye(K), (1, K))
    # rep_ref:         (K, K*K)             repeat(eye(K), K, axis=1)
    # logmat_flat_ref: (1, K*K)             logmat flattened row-major
    # o_ref:           (tm, K*K)            flattened normalized log transition tile
    xu = xu_ref[...]
    s_all = s_ref[...]
    fill_all = fill_ref[...]
    degree = s_all.shape[0]

    # In-kernel polynomial feature construction (no HBM round trip for feat).
    feat = (jnp.dot(xu, s_all[0], preferred_element_type=jnp.float32)
            + fill_all[0][None, :])
    for g in range(1, degree):
        feat = feat * (jnp.dot(xu, s_all[g], preferred_element_type=jnp.float32)
                       + fill_all[g][None, :])

    out = jnp.dot(feat, coefT_ref[...], preferred_element_type=jnp.float32)   # (tm, K)

    # lse[t, i] = logsumexp_j(logmat[i, j] + out[t, j])
    #           = m_t + log(sum_j exp(logmat[i, j]) * exp(out[t, j] - m_t))
    m_t = jnp.max(out, axis=-1, keepdims=True)                                # (tm, 1)
    p = jnp.exp(out - m_t)                                                    # (tm, K)  exp on K, not K*K
    lse = m_t + jnp.log(jnp.dot(p, matT_ref[...],
                                preferred_element_type=jnp.float32))          # (tm, K)

    # flat[t, i*K + j] = logmat[i, j] + out[t, j] - lse[t, i]
    flat = (logmat_flat_ref[...]
            + jnp.dot(out, tile_ref[...], preferred_element_type=jnp.float32)
            - jnp.dot(lse, rep_ref[...], preferred_element_type=jnp.float32))
    # TODO(synk): optionally store bf16 here (halves writeback) if downstream tolerates it.
    o_ref[...] = flat.astype(o_ref.dtype)


def _pick_tm(T, tm_max=512):
    # Large tiles (amortize ~0.35us/step grid overhead), rows a multiple of 8,
    # and at least 2 grid steps when T allows (v7x has 2 TensorCores).
    half = _ceil_to(_ceil_to(T, 2) // 2 if T > 1 else T, 8)
    half = max(8, half)
    return max(8, min(tm_max, half))


def recurrent_poly_forward(xu, coef, logmat, degree=3, tm=None):
    xu = jnp.asarray(xu, jnp.float32)
    coef = jnp.asarray(coef, jnp.float32)
    logmat = jnp.asarray(logmat, jnp.float32)

    T, d = xu.shape
    K, nb_feat = coef.shape
    KK = K * K

    combos = [c for dg in range(1, degree + 1)
              for c in itertools.combinations_with_replacement(range(d), dg)]
    assert len(combos) == nb_feat, "coef width must match PolynomialFeatures count"

    F_pad = max(128, _ceil_to(nb_feat, 128))
    d_pad = _ceil_to(d, 8)

    # Selection matrices so that  feat = prod_g (xu @ S[g] + fill[g])
    S_np = np.zeros((degree, d_pad, F_pad), np.float32)
    fill_np = np.zeros((degree, F_pad), np.float32)
    for f, combo in enumerate(combos):
        for g in range(degree):
            if g < len(combo):
                S_np[g, combo[g], f] = 1.0
            else:
                fill_np[g, f] = 1.0
    S = jnp.asarray(S_np)
    fill = jnp.asarray(fill_np)

    coefT_pad = jnp.zeros((F_pad, K), jnp.float32).at[:nb_feat, :].set(coef.T)
    matT = jnp.exp(logmat).T                                        # (K, K), logmat <= 0
    TILE = jnp.tile(jnp.eye(K, dtype=jnp.float32), (1, K))          # (K, K*K)
    REP = jnp.repeat(jnp.eye(K, dtype=jnp.float32), K, axis=1)      # (K, K*K)
    logmat_flat = logmat.reshape(1, KK)

    if tm is None:
        tm = _pick_tm(T)
    tm = max(8, _ceil_to(tm, 8))
    T_pad = _ceil_to(T, tm)
    xu_p = jnp.zeros((T_pad, d_pad), jnp.float32).at[:T, :d].set(xu)

    grid = (T_pad // tm,)

    flat_out = pl.pallas_call(
        _logtrans_kernel,
        out_shape=jax.ShapeDtypeStruct((T_pad, KK), jnp.float32),
        grid_spec=pltpu.PrefetchScalarGridSpec(
            num_scalar_prefetch=0,
            grid=grid,
            in_specs=[
                pl.BlockSpec((tm, d_pad), lambda i: (i, 0)),             # xu tile
                pl.BlockSpec((degree, d_pad, F_pad), lambda i: (0, 0, 0)),
                pl.BlockSpec((degree, F_pad), lambda i: (0, 0)),
                pl.BlockSpec((F_pad, K), lambda i: (0, 0)),
                pl.BlockSpec((K, K), lambda i: (0, 0)),
                pl.BlockSpec((K, KK), lambda i: (0, 0)),
                pl.BlockSpec((K, KK), lambda i: (0, 0)),
                pl.BlockSpec((1, KK), lambda i: (0, 0)),
            ],
            out_specs=pl.BlockSpec((tm, KK), lambda i: (i, 0)),
        ),
        compiler_params=pltpu.CompilerParams(
            dimension_semantics=("parallel",)),
    )(xu_p, S, fill, coefT_pad, matT, TILE, REP, logmat_flat)

    return flat_out[:T].reshape(T, K, K)


if __name__ == "__main__":
    # Module hyper-parameters (small, consistent with __init__)
    nb_states, dm_obs, dm_act, degree = 8, 3, 1, 3
    d = dm_obs + dm_act
    nb_feat = comb(degree + d, degree) - 1          # = 34 for d=4, degree=3
    T = 100                                         # exercises padding + 2-step grid

    key = jax.random.PRNGKey(0)
    k_coef, k_mat, k_xu = jax.random.split(key, 3)

    # Deterministic parameter init mirroring __init__
    stdv = jnp.sqrt(jnp.asarray(1.0 / (dm_obs + dm_act + nb_states), jnp.float32))
    coef = stdv * jax.random.normal(k_coef, (nb_states, nb_feat), jnp.float32)
    mat = 0.95 * jnp.eye(nb_states, dtype=jnp.float32) \
        + 0.05 * jax.random.uniform(k_mat, (nb_states, nb_states), jnp.float32)
    mat = mat / jnp.sum(mat, axis=1, keepdims=True)
    logmat = jnp.log(mat)

    # Input xu: concatenated (obs, act)
    xu = jax.random.normal(k_xu, (T, d), jnp.float32)

    logtrans = recurrent_poly_forward(xu, coef, logmat, degree=degree)
    jax.block_until_ready(logtrans)

    # Pure-JAX reference
    feat_ref = poly_features(xu, degree)
    out_ref = jnp.dot(feat_ref, coef.T, precision=jax.lax.Precision.HIGHEST)
    lt_ref = logmat[None, :, :] + out_ref[:, None, :]
    ref = lt_ref - jax.nn.logsumexp(lt_ref, axis=-1, keepdims=True)

    assert logtrans.shape == (T, nb_states, nb_states)
    assert jnp.allclose(logtrans, ref, atol=1e-4, rtol=1e-5)

    print("KERNEL_OK")
</pallas_src>

<mosaic_0001>
module attributes {stable_mosaic.version = 11 : i64} {
  func.func @_logtrans_kernel(%arg0: i32, %arg1: memref<56x8xf32, #tpu.memory_space<vmem>>, %arg2: memref<3x8x128xf32, #tpu.memory_space<vmem>>, %arg3: memref<3x128xf32, #tpu.memory_space<vmem>>, %arg4: memref<128x8xf32, #tpu.memory_space<vmem>>, %arg5: memref<8x8xf32, #tpu.memory_space<vmem>>, %arg6: memref<8x64xf32, #tpu.memory_space<vmem>>, %arg7: memref<8x64xf32, #tpu.memory_space<vmem>>, %arg8: memref<1x64xf32, #tpu.memory_space<vmem>>, %arg9: memref<56x64xf32, #tpu.memory_space<vmem>>) attributes {dimension_semantics = [#tpu.dimension_semantics<parallel>], iteration_bounds = array<i64: 2>, scalar_prefetch = 0 : i64, scratch_operands = 0 : i64, tpu.core_type = #tpu.core_type<tc>, window_params = [{transform_indices = @transform_0, window_bounds = array<i64: 56, 8>}, {pipeline_mode = #tpu.pipeline_mode<synchronous>, transform_indices = @transform_1, window_bounds = array<i64: 3, 8, 128>}, {pipeline_mode = #tpu.pipeline_mode<synchronous>, transform_indices = @transform_2, window_bounds = array<i64: 3, 128>}, {pipeline_mode = #tpu.pipeline_mode<synchronous>, transform_indices = @transform_3, window_bounds = array<i64: 128, 8>}, {pipeline_mode = #tpu.pipeline_mode<synchronous>, transform_indices = @transform_4, window_bounds = array<i64: 8, 8>}, {pipeline_mode = #tpu.pipeline_mode<synchronous>, transform_indices = @transform_5, window_bounds = array<i64: 8, 64>}, {pipeline_mode = #tpu.pipeline_mode<synchronous>, transform_indices = @transform_6, window_bounds = array<i64: 8, 64>}, {pipeline_mode = #tpu.pipeline_mode<synchronous>, transform_indices = @transform_7, window_bounds = array<i64: 1, 64>}, {transform_indices = @transform_8, window_bounds = array<i64: 56, 64>}]} {
    %c0 = arith.constant 0 : index
    %c0_0 = arith.constant 0 : index
    %0 = vector.load %arg1[%c0, %c0_0] : memref<56x8xf32, #tpu.memory_space<vmem>>, vector<56x8xf32>
    %c0_1 = arith.constant 0 : index
    %c0_2 = arith.constant 0 : index
    %c0_3 = arith.constant 0 : index
    %1 = vector.load %arg2[%c0_1, %c0_2, %c0_3] : memref<3x8x128xf32, #tpu.memory_space<vmem>>, vector<3x8x128xf32>
    %c0_4 = arith.constant 0 : index
    %c0_5 = arith.constant 0 : index
    %2 = vector.load %arg3[%c0_4, %c0_5] : memref<3x128xf32, #tpu.memory_space<vmem>>, vector<3x128xf32>
    %3 = vector.extract_strided_slice %1 {offsets = [0, 0, 0], sizes = [1, 8, 128], strides = [1, 1, 1]} : vector<3x8x128xf32> to vector<1x8x128xf32>
    %4 = vector.shape_cast %3 : vector<1x8x128xf32> to vector<8x128xf32>
    %cst = arith.constant dense<0.000000e+00> : vector<56x128xf32>
    %5 = tpu.matmul %0, %4, %cst {dimension_numbers = #tpu.dot_dimension_numbers<[1], [0], [0], [1], [0, 0, 1, 1], [], []>} : vector<56x8xf32>, vector<8x128xf32>, vector<56x128xf32> -> vector<56x128xf32>
    %6 = vector.extract_strided_slice %2 {offsets = [0, 0], sizes = [1, 128], strides = [1, 1]} : vector<3x128xf32> to vector<1x128xf32>
    %7 = vector.shape_cast %6 : vector<1x128xf32> to vector<128xf32>
    %8 = vector.shape_cast %7 : vector<128xf32> to vector<1x128xf32>
    %9 = vector.broadcast %8 : vector<1x128xf32> to vector<56x128xf32>
    %10 = arith.addf %5, %9 : vector<56x128xf32>
    %11 = vector.extract_strided_slice %1 {offsets = [1, 0, 0], sizes = [1, 8, 128], strides = [1, 1, 1]} : vector<3x8x128xf32> to vector<1x8x128xf32>
    %12 = vector.shape_cast %11 : vector<1x8x128xf32> to vector<8x128xf32>
    %cst_6 = arith.constant dense<0.000000e+00> : vector<56x128xf32>
    %13 = tpu.matmul %0, %12, %cst_6 {dimension_numbers = #tpu.dot_dimension_numbers<[1], [0], [0], [1], [0, 0, 1, 1], [], []>} : vector<56x8xf32>, vector<8x128xf32>, vector<56x128xf32> -> vector<56x128xf32>
    %14 = vector.extract_strided_slice %2 {offsets = [1, 0], sizes = [1, 128], strides = [1, 1]} : vector<3x128xf32> to vector<1x128xf32>
    %15 = vector.shape_cast %14 : vector<1x128xf32> to vector<128xf32>
    %16 = vector.shape_cast %15 : vector<128xf32> to vector<1x128xf32>
    %17 = vector.broadcast %16 : vector<1x128xf32> to vector<56x128xf32>
    %18 = arith.addf %13, %17 : vector<56x128xf32>
    %19 = arith.mulf %10, %18 : vector<56x128xf32>
    %20 = vector.extract_strided_slice %1 {offsets = [2, 0, 0], sizes = [1, 8, 128], strides = [1, 1, 1]} : vector<3x8x128xf32> to vector<1x8x128xf32>
    %21 = vector.shape_cast %20 : vector<1x8x128xf32> to vector<8x128xf32>
    %cst_7 = arith.constant dense<0.000000e+00> : vector<56x128xf32>
    %22 = tpu.matmul %0, %21, %cst_7 {dimension_numbers = #tpu.dot_dimension_numbers<[1], [0], [0], [1], [0, 0, 1, 1], [], []>} : vector<56x8xf32>, vector<8x128xf32>, vector<56x128xf32> -> vector<56x128xf32>
    %23 = vector.extract_strided_slice %2 {offsets = [2, 0], sizes = [1, 128], strides = [1, 1]} : vector<3x128xf32> to vector<1x128xf32>
    %24 = vector.shape_cast %23 : vector<1x128xf32> to vector<128xf32>
    %25 = vector.shape_cast %24 : vector<128xf32> to vector<1x128xf32>
    %26 = vector.broadcast %25 : vector<1x128xf32> to vector<56x128xf32>
    %27 = arith.addf %22, %26 : vector<56x128xf32>
    %28 = arith.mulf %19, %27 : vector<56x128xf32>
    %c0_8 = arith.constant 0 : index
    %c0_9 = arith.constant 0 : index
    %29 = vector.load %arg4[%c0_8, %c0_9] : memref<128x8xf32, #tpu.memory_space<vmem>>, vector<128x8xf32>
    %cst_10 = arith.constant dense<0.000000e+00> : vector<56x8xf32>
    %30 = tpu.matmul %28, %29, %cst_10 {dimension_numbers = #tpu.dot_dimension_numbers<[1], [0], [0], [1], [0, 0, 1, 1], [], []>} : vector<56x128xf32>, vector<128x8xf32>, vector<56x8xf32> -> vector<56x8xf32>
    %cst_11 = arith.constant dense<0xFF800000> : vector<56xf32>
    %31 = vector.multi_reduction <maximumf>, %30, %cst_11 [1] : vector<56x8xf32> to vector<56xf32>
    %32 = vector.shape_cast %31 : vector<56xf32> to vector<56x1xf32>
    %33 = vector.broadcast %32 : vector<56x1xf32> to vector<56x8xf32>
    %34 = arith.subf %30, %33 : vector<56x8xf32>
    %35 = math.exp %34 : vector<56x8xf32>
    %c0_12 = arith.constant 0 : index
    %c0_13 = arith.constant 0 : index
    %36 = vector.load %arg5[%c0_12, %c0_13] : memref<8x8xf32, #tpu.memory_space<vmem>>, vector<8x8xf32>
    %cst_14 = arith.constant dense<0.000000e+00> : vector<56x8xf32>
    %37 = tpu.matmul %35, %36, %cst_14 {dimension_numbers = #tpu.dot_dimension_numbers<[1], [0], [0], [1], [0, 0, 1, 1], [], []>} : vector<56x8xf32>, vector<8x8xf32>, vector<56x8xf32> -> vector<56x8xf32>
    %38 = math.log %37 : vector<56x8xf32>
    %39 = vector.broadcast %32 : vector<56x1xf32> to vector<56x8xf32>
    %40 = arith.addf %39, %38 : vector<56x8xf32>
    %c0_15 = arith.constant 0 : index
    %c0_16 = arith.constant 0 : index
    %41 = vector.load %arg8[%c0_15, %c0_16] : memref<1x64xf32, #tpu.memory_space<vmem>>, vector<1x64xf32>
    %c0_17 = arith.constant 0 : index
    %c0_18 = arith.constant 0 : index
    %42 = vector.load %arg6[%c0_17, %c0_18] : memref<8x64xf32, #tpu.memory_space<vmem>>, vector<8x64xf32>
    %cst_19 = arith.constant dense<0.000000e+00> : vector<56x64xf32>
    %43 = tpu.matmul %30, %42, %cst_19 {dimension_numbers = #tpu.dot_dimension_numbers<[1], [0], [0], [1], [0, 0, 1, 1], [], []>} : vector<56x8xf32>, vector<8x64xf32>, vector<56x64xf32> -> vector<56x64xf32>
    %44 = vector.broadcast %41 : vector<1x64xf32> to vector<56x64xf32>
    %45 = arith.addf %44, %43 : vector<56x64xf32>
    %c0_20 = arith.constant 0 : index
    %c0_21 = arith.constant 0 : index
    %46 = vector.load %arg7[%c0_20, %c0_21] : memref<8x64xf32, #tpu.memory_space<vmem>>, vector<8x64xf32>
    %cst_22 = arith.constant dense<0.000000e+00> : vector<56x64xf32>
    %47 = tpu.matmul %40, %46, %cst_22 {dimension_numbers = #tpu.dot_dimension_numbers<[1], [0], [0], [1], [0, 0, 1, 1], [], []>} : vector<56x8xf32>, vector<8x64xf32>, vector<56x64xf32> -> vector<56x64xf32>
    %48 = arith.subf %45, %47 : vector<56x64xf32>
    %c0_23 = arith.constant 0 : index
    %c0_24 = arith.constant 0 : index
    %49 = vector.load %arg9[%c0_23, %c0_24] : memref<56x64xf32, #tpu.memory_space<vmem>>, vector<56x64xf32>
    tpu.vector_store %arg9[%c0_23, %c0_24], %48 {strides = array<i32>} : memref<56x64xf32, #tpu.memory_space<vmem>>, vector<56x64xf32>,
    return
  }
  func.func @transform_0(%arg0: i32) -> (i32, i32) {
    %c0_i32 = arith.constant 0 : i32
    %c0_i32_0 = arith.constant 0 : i32
    return %arg0, %c0_i32 : i32, i32
  }
  func.func @transform_1(%arg0: i32) -> (i32, i32, i32) {
    %c0_i32 = arith.constant 0 : i32
    %c0_i32_0 = arith.constant 0 : i32
    %c0_i32_1 = arith.constant 0 : i32
    %c0_i32_2 = arith.constant 0 : i32
    return %c0_i32, %c0_i32_0, %c0_i32_1 : i32, i32, i32
  }
  func.func @transform_2(%arg0: i32) -> (i32, i32) {
    %c0_i32 = arith.constant 0 : i32
    %c0_i32_0 = arith.constant 0 : i32
    %c0_i32_1 = arith.constant 0 : i32
    return %c0_i32, %c0_i32_0 : i32, i32
  }
  func.func @transform_3(%arg0: i32) -> (i32, i32) {
    %c0_i32 = arith.constant 0 : i32
    %c0_i32_0 = arith.constant 0 : i32
    %c0_i32_1 = arith.constant 0 : i32
    return %c0_i32, %c0_i32_0 : i32, i32
  }
  func.func @transform_4(%arg0: i32) -> (i32, i32) {
    %c0_i32 = arith.constant 0 : i32
    %c0_i32_0 = arith.constant 0 : i32
    %c0_i32_1 = arith.constant 0 : i32
    return %c0_i32, %c0_i32_0 : i32, i32
  }
  func.func @transform_5(%arg0: i32) -> (i32, i32) {
    %c0_i32 = arith.constant 0 : i32
    %c0_i32_0 = arith.constant 0 : i32
    %c0_i32_1 = arith.constant 0 : i32
    return %c0_i32, %c0_i32_0 : i32, i32
  }
  func.func @transform_6(%arg0: i32) -> (i32, i32) {
    %c0_i32 = arith.constant 0 : i32
    %c0_i32_0 = arith.constant 0 : i32
    %c0_i32_1 = arith.constant 0 : i32
    return %c0_i32, %c0_i32_0 : i32, i32
  }
  func.func @transform_7(%arg0: i32) -> (i32, i32) {
    %c0_i32 = arith.constant 0 : i32
    %c0_i32_0 = arith.constant 0 : i32
    %c0_i32_1 = arith.constant 0 : i32
    return %c0_i32, %c0_i32_0 : i32, i32
  }
  func.func @transform_8(%arg0: i32) -> (i32, i32) {
    %c0_i32 = arith.constant 0 : i32
    %c0_i32_0 = arith.constant 0 : i32
    return %arg0, %c0_i32 : i32, i32
  }
}

</mosaic_0001>

<bundles_post_ra>
// kernel: tpu_custom_call.1
= control target key start
LH: loop header
LB: loop body
LE: loop exit
PB: predicated region body
PF: predicated region fallthrough
CT: control target
= control target key end

     0   :  { %s1707_s27 = smov 0   ;;  %s2074_s0 = inlined_call_operand.vmem [shape: f32[112,8], index: 0, kind: input, shape index: {}]   ;;  %s2075_s1 = inlined_call_operand.vmem [shape: f32[3,8,128], index: 1, kind: input, shape index: {}]   ;;  %s2076_s2 = inlined_call_operand.vmem [shape: f32[3,128], index: 2, kind: input, shape index: {}]   ;;  %s2077_s3 = inlined_call_operand.vmem [shape: f32[128,8], index: 3, kind: input, shape index: {}]   ;;  %s2078_s4 = inlined_call_operand.vmem [shape: f32[8,8], index: 4, kind: input, shape index: {}]   ;;  %s2079_s5 = inlined_call_operand.vmem [shape: f32[8,64], index: 5, kind: input, shape index: {}]   ;;  %s2080_s6 = inlined_call_operand.vmem [shape: f32[8,64], index: 6, kind: input, shape index: {}]   ;;  %s2081_s7 = inlined_call_operand.vmem [shape: f32[1,64], index: 7, kind: input, shape index: {}]   ;;  %s2082_s8 = inlined_call_operand.vmem [shape: f32[112,64], index: 8, kind: output, shape index: {}]  }
   0x1 LB: > { %s1298_s28 = sadd.s32 4294967295, %s1658_s27   ;;  %p1302_p0 = scmp.ge.s32.totalorder %s1658_s27, 1  ;;  %s1658_s27 = sphi %s1707_s27, %s18_s27  }
   0x2   : > { %p263_p1 = scmp.lt.s32.totalorder %s1658_s27, 3 }
   0x4   : > { %p264_p2 = pnand %p1302_p0, %p263_p1 }
   0x5   : > { %s297_s9 = smul.u32 (!%p264_p2), 7, %s1298_s28 }
   0x6   : > { %267 = sbr.rel (%p264_p2) target bundleno = 1010 (0x3f2), region = 52 }
   0x7   : > { %p298_p3 = scmp.lt.s32.totalorder (!%p264_p2), %s297_s9, 13 }
   0xb   : > { %v316_v0 = vld [vmem:[%s2075_s1] sm:$0xff]  ;;  %v1660_v1 = vmov 0.0   ;;  %vm1661_vm0 = vmmov 0   ;;  %s2084_s9 = smov (!%p298_p3, %s297_s9), 13  ;;  %vm324_vm1 = vcmask 64512   ;;  %v318_v2 = vld [vmem:[%s2075_s1 + $0x10] sm:$0xff]  ;;  %v320_v27 = vlaneseq }
   0xc   : > { %1421 = vmatprep.subr.mxu0 %v1660_v1  ;;  %1612 = vmatprep.subr.mxu1 %v1660_v1  ;;  %s1303_s10 = sshll.u32 %s2084_s9, 3  ;;  %v317_v3 = vld [vmem:[%s2075_s1 + $0x8] sm:$0xff]  ;;  %v683_v11 = vld [vmem:[%s2077_s3 + $0x78] sm:$0xff]  ;;  %v682_v12 = vld [vmem:[%s2077_s3 + $0x70] sm:$0xff]  ;;  %vm1234_vm2 = vcmask 523264  }
   0xd   : > { %1422 = vmatpush3.msra.mxu0 %v316_v0  ;;  %1613 = vmatpush3.msra.mxu1 %v316_v0  ;;  %s301_s13 = scalar_lea.vmem %s2074_s0, %s1303_s10  ;;  %v681_v13 = vld [vmem:[%s2077_s3 + $0x68] sm:$0xff]  ;;  %v680_v14 = vld [vmem:[%s2077_s3 + $0x60] sm:$0xff]  ;;  %v679_v15 = vld [vmem:[%s2077_s3 + $0x58] sm:$0xff]  ;;  %v321_v32 = vshrl.u32 %v320_v27, 7  ;;  %s2049_s24 = scalar_lea.vmem %s2082_s8, %s1303_s10 }
   0xe   : > { %1423 = vmatprep.mubr.msk.f32.mxu0 %vm1661_vm0, %v1660_v1  ;;  %1435 = vmatprep.mubr.msk.f32.mxu1 %vm1661_vm0, %v1660_v1  ;;  %v309_v4 = vld [vmem:[%s301_s13] sm:$0xff]  ;;  %v310_v6 = vld [vmem:[%s301_s13 + $0x8] sm:$0xff]  ;;  %v311_v8 = vld [vmem:[%s301_s13 + $0x10] sm:$0xff] }
   0xf   : > { %1467 = vmatprep.subr.mxu0 %v1660_v1  ;;  %1444 = vmatprep.subr.mxu1 %v1660_v1  ;;  %v313_v5 = vld [vmem:[%s301_s13 + $0x20] sm:$0xff]  ;;  %v314_v7 = vld [vmem:[%s301_s13 + $0x28] sm:$0xff]  ;;  %v315_v9 = vld [vmem:[%s301_s13 + $0x30] sm:$0xff]  ;;  %v448_v35 = vsub.s32 1, %v321_v32  ;;  %v322_v38 = vsub.s32 0, %v321_v32  ;;  %v559_v43 = vsub.s32 2, %v321_v32 }
  0x10   : > { %1424 = vmatmul.mubr.msk.f32.vlgmr.msra.gmra.mxu0 %vm324_vm1, %v309_v4  ;;  %1436 = vmatmul.mubr.msk.f32.vlgmr.msra.gmra.mxu1 %vm324_vm1, %v313_v5  ;;  %v312_v10 = vld [vmem:[%s301_s13 + $0x18] sm:$0xff]  ;;  %v678_v16 = vld [vmem:[%s2077_s3 + $0x50] sm:$0xff]  ;;  %v677_v17 = vld [vmem:[%s2077_s3 + $0x48] sm:$0xff] }
  0x11   : > { %1468 = vmatpush3.msra.mxu0 %v318_v2  ;;  %1445 = vmatpush3.msra.mxu1 %v317_v3  ;;  %v676_v18 = vld [vmem:[%s2077_s3 + $0x40] sm:$0xff]  ;;  %v675_v19 = vld [vmem:[%s2077_s3 + $0x38] sm:$0xff]  ;;  %v674_v20 = vld [vmem:[%s2077_s3 + $0x30] sm:$0xff] }
  0x12   : > { %1426 = vmatprep.mubr.msk.f32.mxu0 %vm1661_vm0, %v1660_v1  ;;  %1438 = vmatprep.mubr.msk.f32.mxu1 %vm1661_vm0, %v1660_v1  ;;  %v673_v21 = vld [vmem:[%s2077_s3 + $0x28] sm:$0xff]  ;;  %v672_v22 = vld [vmem:[%s2077_s3 + $0x20] sm:$0xff]  ;;  %v671_v23 = vld [vmem:[%s2077_s3 + $0x18] sm:$0xff] }
  0x13   : > { %1490 = vmatprep.subr.mxu1 %v1660_v1  ;;  %1543 = vmatprep.subr.mxu0 %v1660_v1  ;;  %v670_v24 = vld [vmem:[%s2077_s3 + $0x10] sm:$0xff]  ;;  %v669_v25 = vld [vmem:[%s2077_s3 + $0x8] sm:$0xff]  ;;  %v668_v26 = vld [vmem:[%s2077_s3] sm:$0xff] }
  0x14   : > { %1427 = vmatmul.mubr.msk.f32.gmra.mxu0 %vm324_vm1, %v310_v6  ;;  %1439 = vmatmul.mubr.msk.f32.gmra.mxu1 %vm324_vm1, %v314_v7  ;;  %v319_v39 = vld [vmem:[%s2076_s2] sm:$0x7] }
  0x15   : > { %1429 = vmatprep.mubr.msk.f32.mxu0 %vm1661_vm0, %v1660_v1  ;;  %1441 = vmatprep.mubr.msk.f32.mxu1 %vm1661_vm0, %v1660_v1  ;;  %v1878_v42 = vrot.slane %v319_v39, %v448_v35  ;;  %v1880_v46 = vrot.slane %v319_v39, %v322_v38  ;;  %v1883_v50 = vrot.slane %v319_v39, %v559_v43 }
  0x18   : > { %1430 = vmatmul.mubr.msk.f32.gmra.mxu0 %vm324_vm1, %v311_v8  ;;  %1442 = vmatmul.mubr.msk.f32.gmra.mxu1 %vm324_vm1, %v315_v9 }
  0x19   : > { %1432 = vmatprep.mubr.msk.f32.mxu0 %vm1661_vm0, %v1660_v1  ;;  %1446 = vmatprep.mubr.msk.f32.mxu1 %vm1661_vm0, %v1660_v1 }
  0x1c   : > { %1433 = vmatmul.mubr.msk.f32.gmra.mxu0 %vm324_vm1, %v312_v10  ;;  %1447 = vmatmul.mubr.msk.f32.vlgmr.msra.gmra.mxu1 %vm324_vm1, %v309_v4 }
  0x1d   : > { %1449 = vmatprep.mubr.msk.f32.mxu1 %vm1661_vm0, %v1660_v1  ;;  %1469 = vmatprep.mubr.msk.f32.mxu0 %vm1661_vm0, %v1660_v1 }
  0x1e   : > { %1491 = vmatpush3.msra.mxu1 %v683_v11 }
  0x1f   : > { %1492 = vmatprep.subr.mxu1 %v1660_v1 }
  0x20   : > { %1450 = vmatmul.mubr.msk.f32.gmra.mxu1 %vm324_vm1, %v310_v6  ;;  %1470 = vmatmul.mubr.msk.f32.vlgmr.msra.gmra.mxu0 %vm324_vm1, %v309_v4 }
  0x21   : > { %1452 = vmatprep.mubr.msk.f32.mxu1 %vm1661_vm0, %v1660_v1  ;;  %1472 = vmatprep.mubr.msk.f32.mxu0 %vm1661_vm0, %v1660_v1 }
  0x22   : > { %1493 = vmatpush3.msra.mxu1 %v682_v12 }
  0x23   : > { %1494 = vmatprep.subr.mxu1 %v1660_v1 }
  0x24   : > { %1453 = vmatmul.mubr.msk.f32.gmra.mxu1 %vm324_vm1, %v311_v8  ;;  %1473 = vmatmul.mubr.msk.f32.gmra.mxu0 %vm324_vm1, %v310_v6 }
  0x25   : > { %1455 = vmatprep.mubr.msk.f32.mxu1 %vm1661_vm0, %v1660_v1  ;;  %1475 = vmatprep.mubr.msk.f32.mxu0 %vm1661_vm0, %v1660_v1 }
  0x26   : > { %1495 = vmatpush3.msra.mxu1 %v681_v13 }
  0x27   : > { %1496 = vmatprep.subr.mxu1 %v1660_v1 }
  0x28   : > { %1456 = vmatmul.mubr.msk.f32.gmra.mxu1 %vm324_vm1, %v312_v10  ;;  %1476 = vmatmul.mubr.msk.f32.gmra.mxu0 %vm324_vm1, %v311_v8 }
  0x29   : > { %1458 = vmatprep.mubr.msk.f32.mxu1 %vm1661_vm0, %v1660_v1  ;;  %1478 = vmatprep.mubr.msk.f32.mxu0 %vm1661_vm0, %v1660_v1 }
  0x2a   : > { %1497 = vmatpush3.msra.mxu1 %v680_v14 }
  0x2b   : > { %1498 = vmatprep.subr.mxu1 %v1660_v1 }
  0x2c   : > { %1459 = vmatmul.mubr.msk.f32.gmra.mxu1 %vm324_vm1, %v313_v5  ;;  %1479 = vmatmul.mubr.msk.f32.gmra.mxu0 %vm324_vm1, %v312_v10 }
  0x2d   : > { %1461 = vmatprep.mubr.msk.f32.mxu1 %vm1661_vm0, %v1660_v1  ;;  %1481 = vmatprep.mubr.msk.f32.mxu0 %vm1661_vm0, %v1660_v1 }
  0x2e   : > { %1499 = vmatpush3.msra.mxu1 %v679_v15 }
  0x2f   : > { %1500 = vmatprep.subr.mxu1 %v1660_v1 }
  0x30   : > { %1462 = vmatmul.mubr.msk.f32.gmra.mxu1 %vm324_vm1, %v314_v7  ;;  %1482 = vmatmul.mubr.msk.f32.gmra.mxu0 %vm324_vm1, %v313_v5 }
  0x31   : > { %1464 = vmatprep.mubr.msk.f32.mxu1 %vm1661_vm0, %v1660_v1  ;;  %1484 = vmatprep.mubr.msk.f32.mxu0 %vm1661_vm0, %v1660_v1 }
  0x32   : > { %1501 = vmatpush3.msra.mxu1 %v678_v16 }
  0x33   : > { %1502 = vmatprep.subr.mxu1 %v1660_v1 }
  0x34   : > { %1465 = vmatmul.mubr.msk.f32.gmra.mxu1 %vm324_vm1, %v315_v9  ;;  %1485 = vmatmul.mubr.msk.f32.gmra.mxu0 %vm324_vm1, %v314_v7 }
  0x35   : > { %1487 = vmatprep.mubr.msk.f32.mxu0 %vm1661_vm0, %v1660_v1  ;;  %1522 = vmatprep.mubr.msk.f32.mxu1 %vm1661_vm0, %v1660_v1 }
  0x36   : > { %1503 = vmatpush3.msra.mxu1 %v677_v17 }
  0x37   : > { %1504 = vmatprep.subr.mxu1 %v1660_v1 }
  0x38   : > { %1488 = vmatmul.mubr.msk.f32.gmra.mxu0 %vm324_vm1, %v315_v9  ;;  %1505 = vmatpush3.msra.mxu1 %v676_v18 }
  0x39   : > { %1545 = vmatprep.mubr.msk.f32.mxu0 %vm1661_vm0, %v1660_v1  ;;  %1506 = vmatprep.subr.mxu1 %v1660_v1 }
  0x3a   : > { %1507 = vmatpush3.msra.mxu1 %v675_v19 }
  0x3b   : > { %1508 = vmatprep.subr.mxu1 %v1660_v1 }
  0x3c   : > { %1509 = vmatpush3.msra.mxu1 %v674_v20 }
  0x3d   : > { %1510 = vmatprep.subr.mxu1 %v1660_v1 }
  0x3e   : > { %1511 = vmatpush3.msra.mxu1 %v673_v21 }
  0x3f   : > { %1512 = vmatprep.subr.mxu1 %v1660_v1 }
  0x40   : > { %1513 = vmatpush3.msra.mxu1 %v672_v22 }
  0x41   : > { %1514 = vmatprep.subr.mxu1 %v1660_v1 }
  0x42   : > { %1515 = vmatpush3.msra.mxu1 %v671_v23 }
  0x43   : > { %1516 = vmatprep.subr.mxu1 %v1660_v1 }
  0x44   : > { %1517 = vmatpush3.msra.mxu1 %v670_v24 }
  0x45   : > { %1518 = vmatprep.subr.mxu1 %v1660_v1 }
  0x46   : > { %1519 = vmatpush3.msra.mxu1 %v669_v25 }
  0x47   : > { %1520 = vmatprep.subr.mxu1 %v1660_v1 }
  0x48   : > { %1521 = vmatpush3.msra.mxu1 %v668_v26 }
  0x49   : > { %1566 = vmatprep.subr.mxu1 %v1660_v1 }
  0xd0   : > { %v412_v28 = vpop.f32.mrf.mxu0  ;;  %v1869_v29 = vpop.f32.mrf.mxu1 }
  0xd1   : > { %v413_v53 = vadd.f32 %v412_v28, %v1880_v46  ;;  %v433_v25 = vadd.f32 %v1869_v29, %v1880_v46 }
  0xd2   : > { %v1425_v30 = vpop.f32.mrf.mxu0  ;;  %v1437_v31 = vpop.f32.mrf.mxu1 }
  0xd4   : > { %v417_v33 = vpop.f32.mrf.mxu0  ;;  %v1871_v34 = vpop.f32.mrf.mxu1 }
  0xd5   : > { %v418_v61 = vadd.f32 %v417_v33, %v1880_v46 }
  0xd6   : > { %v1428_v36 = vpop.f32.mrf.mxu0  ;;  %v1440_v37 = vpop.f32.mrf.mxu1 }
  0xd7   : > { %v438_v36 = vadd.f32 %v1871_v34, %v1880_v46 }
  0xd8   : > { %v422_v40 = vpop.f32.mrf.mxu0  ;;  %v1876_v41 = vpop.f32.mrf.mxu1 }
  0xd9   : > { %v423_v7 = vadd.f32 %v422_v40, %v1880_v46 }
  0xda   : > { %v1431_v44 = vpop.f32.mrf.mxu0  ;;  %v1443_v45 = vpop.f32.mrf.mxu1 }
  0xdc   : > { %v427_v47 = vpop.f32.mrf.mxu0  ;;  %v516_v48 = vpop.f32.mrf.mxu1 }
  0xdd   : > { %v517_v49 = vadd.f32 %v516_v48, %v1878_v42  ;;  %v428_v16 = vadd.f32 %v427_v47, %v1880_v46  ;;  %v443_v47 = vadd.f32 %v1876_v41, %v1880_v46  ;;  %v826_v41 = vld [vmem:[%s2078_s4] sm:$0xff] }
  0xde   : > { %v1434_v51 = vpop.f32.mrf.mxu0  ;;  %v1448_v52 = vpop.f32.mrf.mxu1  ;;  %1544 = vmatpush3.msra.mxu0 %v826_v41 }
  0xdf   : > { %v550_v56 = vmul.f32 %v517_v49, %v413_v53  ;;  %v970_v53 = vld [vmem:[%s2079_s5] sm:$0xff]  ;;  %1589 = vmatprep.subr.mxu0 %v1660_v1 }
  0xe0   : > { %v521_v54 = vpop.f32.mrf.mxu1  ;;  %v627_v55 = vpop.f32.mrf.mxu0 }
  0xe1   : > { %v522_v57 = vadd.f32 %v521_v54, %v1878_v42  ;;  %v628_v58 = vadd.f32 %v627_v55, %v1883_v50 }
  0xe2   : > { %v1451_v59 = vpop.f32.mrf.mxu1  ;;  %v1471_v60 = vpop.f32.mrf.mxu0 }
  0xe3   : > { %v661_v62 = vmul.f32 %v628_v58, %v550_v56  ;;  %v551_v2 = vmul.f32 %v522_v57, %v418_v61 }
  0xe4   : > { %v526_v63 = vpop.f32.mrf.mxu1  ;;  %v632_v0 = vpop.f32.mrf.mxu0 }
  0xe5   : > { %v527_v3 = vadd.f32 %v526_v63, %v1878_v42  ;;  %v633_v4 = vadd.f32 %v632_v0, %v1883_v50  ;;  %1523 = vmatmul.mubr.f32.vlgmr.msra.gmra.mxu1 %v661_v62 }
  0xe6   : > { %v1454_v5 = vpop.f32.mrf.mxu1  ;;  %v1474_v6 = vpop.f32.mrf.mxu0  ;;  %1525 = vmatprep.mubr.msk.f32.mxu1 %vm1661_vm0, %v1660_v1  ;;  %1567 = vmatpush3.msra.mxu1 %v970_v53 }
  0xe7   : > { %v662_v8 = vmul.f32 %v633_v4, %v551_v2  ;;  %v552_v11 = vmul.f32 %v527_v3, %v423_v7 }
  0xe8   : > { %v531_v9 = vpop.f32.mrf.mxu1  ;;  %v637_v10 = vpop.f32.mrf.mxu0 }
  0xe9   : > { %v532_v12 = vadd.f32 %v531_v9, %v1878_v42  ;;  %v638_v13 = vadd.f32 %v637_v10, %v1883_v50  ;;  %1526 = vmatmul.mubr.f32.gmra.mxu1 %v662_v8 }
  0xea   : > { %v1457_v14 = vpop.f32.mrf.mxu1  ;;  %v1477_v15 = vpop.f32.mrf.mxu0  ;;  %1528 = vmatprep.mubr.msk.f32.mxu1 %vm1661_vm0, %v1660_v1 }
  0xeb   : > { %v663_v17 = vmul.f32 %v638_v13, %v552_v11  ;;  %v553_v20 = vmul.f32 %v532_v12, %v428_v16 }
  0xec   : > { %v536_v18 = vpop.f32.mrf.mxu1  ;;  %v642_v19 = vpop.f32.mrf.mxu0 }
  0xed   : > { %v537_v21 = vadd.f32 %v536_v18, %v1878_v42  ;;  %v643_v22 = vadd.f32 %v642_v19, %v1883_v50  ;;  %1529 = vmatmul.mubr.f32.gmra.mxu1 %v663_v17 }
  0xee   : > { %v1460_v23 = vpop.f32.mrf.mxu1  ;;  %v1480_v24 = vpop.f32.mrf.mxu0  ;;  %1531 = vmatprep.mubr.msk.f32.mxu1 %vm1661_vm0, %v1660_v1 }
  0xef   : > { %v664_v26 = vmul.f32 %v643_v22, %v553_v20  ;;  %v554_v30 = vmul.f32 %v537_v21, %v433_v25  ;;  %v1105_v24 = vld [vmem:[%s2080_s6] sm:$0xff] }
  0xf0   : > { %v541_v27 = vpop.f32.mrf.mxu1  ;;  %v647_v28 = vpop.f32.mrf.mxu0 }
  0xf1   : > { %v542_v31 = vadd.f32 %v541_v27, %v1878_v42  ;;  %v648_v32 = vadd.f32 %v647_v28, %v1883_v50  ;;  %1532 = vmatmul.mubr.f32.gmra.mxu1 %v664_v26 }
  0xf2   : > { %v1463_v33 = vpop.f32.mrf.mxu1  ;;  %v1483_v35 = vpop.f32.mrf.mxu0  ;;  %1534 = vmatprep.mubr.msk.f32.mxu1 %vm1661_vm0, %v1660_v1 }
  0xf3   : > { %v665_v37 = vmul.f32 %v648_v32, %v554_v30  ;;  %v555_v39 = vmul.f32 %v542_v31, %v438_v36 }
  0xf4   : > { %v546_v38 = vpop.f32.mrf.mxu1  ;;  %v652_v29 = vpop.f32.mrf.mxu0 }
  0xf5   : > { %v547_v40 = vadd.f32 %v546_v38, %v1878_v42  ;;  %v653_v43 = vadd.f32 %v652_v29, %v1883_v50  ;;  %1535 = vmatmul.mubr.f32.gmra.mxu1 %v665_v37 }
  0xf6   : > { %v1466_v44 = vpop.f32.mrf.mxu1  ;;  %v1486_v45 = vpop.f32.mrf.mxu0  ;;  %1537 = vmatprep.mubr.msk.f32.mxu1 %vm1661_vm0, %v1660_v1 }
  0xf7   : > { %v666_v48 = vmul.f32 %v653_v43, %v555_v39  ;;  %v556_v34 = vmul.f32 %v547_v40, %v443_v47 }
  0xf8   : > { %v657_v49 = vpop.f32.mrf.mxu0 }
  0xf9   : > { %v658_v51 = vadd.f32 %v657_v49, %v1883_v50  ;;  %1538 = vmatmul.mubr.f32.gmra.mxu1 %v666_v48 }
  0xfa   : > { %v1489_v52 = vpop.f32.mrf.mxu0  ;;  %1540 = vmatprep.mubr.msk.f32.mxu1 %vm1661_vm0, %v1660_v1 }
  0xfb   : > { %v667_v42 = vmul.f32 %v658_v51, %v556_v34 }
  0xfd   : > { %1541 = vmatmul.mubr.f32.gmra.mxu1 %v667_v42 }
  0xfe   : > { %1568 = vmatprep.mubr.msk.f32.mxu1 %vm1661_vm0, %v1660_v1 }
 0x1a5   : > { %v750_v46 = vpop.f32.mrf.mxu1 }
 0x1a6   : > { %1569 = vmatmul.mubr.msk.f32.vlgmr.msra.gmra.mxu1 %vm324_vm1, %v750_v46  ;;  %v784_v50 = vsel %vm324_vm1, %v750_v46, -inf }
 0x1a7   : > { %785 = vmax.xlane.f32.xlu0 %v784_v50  ;;  %v1524_v54 = vpop.f32.mrf.mxu1  ;;  %1571 = vmatprep.mubr.msk.f32.mxu1 %vm1661_vm0, %v1660_v1 }
 0x1a9   : > { %v755_v55 = vpop.f32.mrf.mxu1 }
 0x1aa   : > { %1572 = vmatmul.mubr.msk.f32.gmra.mxu1 %vm324_vm1, %v755_v55  ;;  %v787_v56 = vsel %vm324_vm1, %v755_v55, -inf }
 0x1ab   : > { %788 = vmax.xlane.f32.xlu0 %v787_v56  ;;  %v1527_v57 = vpop.f32.mrf.mxu1  ;;  %1574 = vmatprep.mubr.msk.f32.mxu1 %vm1661_vm0, %v1660_v1 }
 0x1ad   : > { %v760_v58 = vpop.f32.mrf.mxu1 }
 0x1ae   : > { %1575 = vmatmul.mubr.msk.f32.gmra.mxu1 %vm324_vm1, %v760_v58  ;;  %v790_v59 = vsel %vm324_vm1, %v760_v58, -inf }
 0x1af   : > { %791 = vmax.xlane.f32.xlu1 %v790_v59  ;;  %v1530_v60 = vpop.f32.mrf.mxu1  ;;  %1577 = vmatprep.mubr.msk.f32.mxu1 %vm1661_vm0, %v1660_v1 }
 0x1b1   : > { %v765_v61 = vpop.f32.mrf.mxu1 }
 0x1b2   : > { %1578 = vmatmul.mubr.msk.f32.gmra.mxu1 %vm324_vm1, %v765_v61  ;;  %v793_v62 = vsel %vm324_vm1, %v765_v61, -inf }
 0x1b3   : > { %794 = vmax.xlane.f32.xlu1 %v793_v62  ;;  %v1533_v63 = vpop.f32.mrf.mxu1  ;;  %1580 = vmatprep.mubr.msk.f32.mxu1 %vm1661_vm0, %v1660_v1 }
 0x1b5   : > { %v770_v0 = vpop.f32.mrf.mxu1 }
 0x1b6   : > { %1581 = vmatmul.mubr.msk.f32.gmra.mxu1 %vm324_vm1, %v770_v0  ;;  %v796_v2 = vsel %vm324_vm1, %v770_v0, -inf }
 0x1b7   : > { %797 = vmax.xlane.f32.xlu0 %v796_v2  ;;  %v1536_v3 = vpop.f32.mrf.mxu1  ;;  %1583 = vmatprep.mubr.msk.f32.mxu1 %vm1661_vm0, %v1660_v1 }
 0x1b9   : > { %v775_v4 = vpop.f32.mrf.mxu1 }
 0x1ba   : > { %1584 = vmatmul.mubr.msk.f32.gmra.mxu1 %vm324_vm1, %v775_v4  ;;  %v799_v5 = vsel %vm324_vm1, %v775_v4, -inf }
 0x1bb   : > { %800 = vmax.xlane.f32.xlu1 %v799_v5  ;;  %v1539_v6 = vpop.f32.mrf.mxu1  ;;  %1586 = vmatprep.mubr.msk.f32.mxu1 %vm1661_vm0, %v1660_v1 }
 0x1bd   : > { %v780_v7 = vpop.f32.mrf.mxu1 }
 0x1be   : > { %1587 = vmatmul.mubr.msk.f32.gmra.mxu1 %vm324_vm1, %v780_v7  ;;  %v802_v8 = vsel %vm324_vm1, %v780_v7, -inf }
 0x1bf   : > { %803 = vmax.xlane.f32.xlu0 %v802_v8  ;;  %v1542_v9 = vpop.f32.mrf.mxu1 }
 0x230   : > { %v1955_v10 = vpop.xlane.xlu0 %785 }
 0x231   : > { %v805_v11 = vsub.f32 %v750_v46, %v1955_v10 }
 0x233   : > { %v812_v12 = vmul.f32 1.442695, %v805_v11 }
 0x234   : > { %v1958_v13 = vpop.xlane.xlu0 %788 }
 0x235   : > { %1624 = vpow2.f32 %v812_v12  ;;  %v806_v14 = vsub.f32 %v755_v55, %v1958_v13 }
 0x237   : > { %v814_v15 = vmul.f32 1.442695, %v806_v14 }
 0x238   : > { %v1961_v16 = vpop.xlane.xlu1 %791 }
 0x239   : > { %1626 = vpow2.f32 %v814_v15  ;;  %v807_v17 = vsub.f32 %v760_v58, %v1961_v16 }
 0x23b   : > { %v816_v18 = vmul.f32 1.442695, %v807_v17 }
 0x23c   : > { %v1964_v19 = vpop.xlane.xlu1 %794 }
 0x23d   : > { %1628 = vpow2.f32 %v816_v18  ;;  %v808_v20 = vsub.f32 %v765_v61, %v1964_v19 }
 0x23f   : > { %v818_v21 = vmul.f32 1.442695, %v808_v20 }
 0x240   : > { %v1967_v22 = vpop.xlane.xlu0 %797 }
 0x241   : > { %1630 = vpow2.f32 %v818_v21  ;;  %v809_v23 = vsub.f32 %v770_v0, %v1967_v22 }
 0x242   : > { %v1625_v25 = vpop.eup %1624 }
 0x243   : > { %v820_v26 = vmul.f32 1.442695, %v809_v23  ;;  %1546 = vmatmul.mubr.msk.f32.vlgmr.msra.gmra.mxu0 %vm324_vm1, %v1625_v25 }
 0x244   : > { %v1974_v27 = vpop.xlane.xlu1 %800  ;;  %1548 = vmatprep.mubr.msk.f32.mxu0 %vm1661_vm0, %v1660_v1  ;;  %1590 = vmatpush3.msra.mxu0 %v1105_v24 }
 0x245   : > { %1632 = vpow2.f32 %v820_v26  ;;  %v810_v28 = vsub.f32 %v775_v4, %v1974_v27 }
 0x246   : > { %v1627_v30 = vpop.eup %1626 }
 0x247   : > { %v822_v31 = vmul.f32 1.442695, %v810_v28  ;;  %1549 = vmatmul.mubr.msk.f32.gmra.mxu0 %vm324_vm1, %v1627_v30 }
 0x248   : > { %v1980_v32 = vpop.xlane.xlu0 %803  ;;  %1551 = vmatprep.mubr.msk.f32.mxu0 %vm1661_vm0, %v1660_v1 }
 0x249   : > { %1634 = vpow2.f32 %v822_v31  ;;  %v811_v33 = vsub.f32 %v780_v7, %v1980_v32 }
 0x24a   : > { %v1629_v35 = vpop.eup %1628 }
 0x24b   : > { %v824_v36 = vmul.f32 1.442695, %v811_v33  ;;  %1552 = vmatmul.mubr.msk.f32.gmra.mxu0 %vm324_vm1, %v1629_v35 }
 0x24c   : > { %1554 = vmatprep.mubr.msk.f32.mxu0 %vm1661_vm0, %v1660_v1 }
 0x24d   : > { %1636 = vpow2.f32 %v824_v36 }
 0x24e   : > { %v1631_v37 = vpop.eup %1630 }
 0x24f   : > { %1555 = vmatmul.mubr.msk.f32.gmra.mxu0 %vm324_vm1, %v1631_v37 }
 0x250   : > { %1557 = vmatprep.mubr.msk.f32.mxu0 %vm1661_vm0, %v1660_v1 }
 0x252   : > { %v1633_v38 = vpop.eup %1632 }
 0x253   : > { %1558 = vmatmul.mubr.msk.f32.gmra.mxu0 %vm324_vm1, %v1633_v38 }
 0x254   : > { %1560 = vmatprep.mubr.msk.f32.mxu0 %vm1661_vm0, %v1660_v1 }
 0x256   : > { %v1635_v29 = vpop.eup %1634 }
 0x257   : > { %1561 = vmatmul.mubr.msk.f32.gmra.mxu0 %vm324_vm1, %v1635_v29 }
 0x258   : > { %1563 = vmatprep.mubr.msk.f32.mxu0 %vm1661_vm0, %v1660_v1 }
 0x25a   : > { %v1637_v39 = vpop.eup %1636 }
 0x25b   : > { %1564 = vmatmul.mubr.msk.f32.gmra.mxu0 %vm324_vm1, %v1637_v39 }
 0x25c   : > { %1591 = vmatprep.mubr.msk.f32.mxu0 %vm1661_vm0, %v1660_v1 }
 0x266   : > { %v2000_v40 = vpop.f32.mrf.mxu1 }
 0x268   : > { %v1570_v43 = vpop.f32.mrf.mxu1 }
 0x26a   : > { %v2002_v44 = vpop.f32.mrf.mxu1 }
 0x26c   : > { %v1573_v45 = vpop.f32.mrf.mxu1 }
 0x26e   : > { %v2004_v47 = vpop.f32.mrf.mxu1 }
 0x270   : > { %v1576_v48 = vpop.f32.mrf.mxu1 }
 0x272   : > { %v2006_v49 = vpop.f32.mrf.mxu1 }
 0x274   : > { %v1579_v34 = vpop.f32.mrf.mxu1 }
 0x276   : > { %v2008_v51 = vpop.f32.mrf.mxu1 }
 0x278   : > { %v1582_v52 = vpop.f32.mrf.mxu1 }
 0x27a   : > { %v2010_v42 = vpop.f32.mrf.mxu1 }
 0x27c   : > { %v1585_v53 = vpop.f32.mrf.mxu1 }
 0x27e   : > { %v2012_v41 = vpop.f32.mrf.mxu1 }
 0x280   : > { %v1588_v46 = vpop.f32.mrf.mxu1 }
 0x303   : > { %v914_v50 = vpop.f32.mrf.mxu0 }
 0x304   : > { %1638 = vlog2.f32 %v914_v50 }
 0x305   : > { %v1547_v54 = vpop.f32.mrf.mxu0 }
 0x307   : > { %v919_v55 = vpop.f32.mrf.mxu0 }
 0x308   : > { %1640 = vlog2.f32 %v919_v55 }
 0x309   : > { %v1550_v56 = vpop.f32.mrf.mxu0 }
 0x30b   : > { %v924_v57 = vpop.f32.mrf.mxu0 }
 0x30c   : > { %1642 = vlog2.f32 %v924_v57 }
 0x30d   : > { %v1553_v58 = vpop.f32.mrf.mxu0 }
 0x30f   : > { %v929_v59 = vpop.f32.mrf.mxu0 }
 0x310   : > { %1644 = vlog2.f32 %v929_v59 }
 0x311   : > { %v1639_v60 = vpop.eup %1638  ;;  %v1556_v61 = vpop.f32.mrf.mxu0 }
 0x312   : > { %v949_v62 = vmul.f32 0.6931472, %v1639_v60 }
 0x313   : > { %v934_v63 = vpop.f32.mrf.mxu0 }
 0x314   : > { %v962_v0 = vadd.f32 %v949_v62, %v1955_v10  ;;  %1646 = vlog2.f32 %v934_v63 }
 0x315   : > { %v1641_v2 = vpop.eup %1640  ;;  %v1559_v3 = vpop.f32.mrf.mxu0 }
 0x316   : > { %v951_v4 = vmul.f32 0.6931472, %v1641_v2  ;;  %1592 = vmatmul.mubr.msk.f32.vlgmr.msra.gmra.mxu0 %vm324_vm1, %v962_v0 }
 0x317   : > { %v939_v5 = vpop.f32.mrf.mxu0  ;;  %1594 = vmatprep.mubr.msk.f32.mxu0 %vm1661_vm0, %v1660_v1 }
 0x318   : > { %v963_v6 = vadd.f32 %v951_v4, %v1958_v13  ;;  %1648 = vlog2.f32 %v939_v5 }
 0x319   : > { %v1643_v7 = vpop.eup %1642  ;;  %v1562_v8 = vpop.f32.mrf.mxu0 }
 0x31a   : > { %v953_v9 = vmul.f32 0.6931472, %v1643_v7  ;;  %1595 = vmatmul.mubr.msk.f32.gmra.mxu0 %vm324_vm1, %v963_v6 }
 0x31b   : > { %v944_v11 = vpop.f32.mrf.mxu0  ;;  %1597 = vmatprep.mubr.msk.f32.mxu0 %vm1661_vm0, %v1660_v1 }
 0x31c   : > { %v964_v10 = vadd.f32 %v953_v9, %v1961_v16  ;;  %1650 = vlog2.f32 %v944_v11 }
 0x31d   : > { %v1645_v12 = vpop.eup %1644  ;;  %v1565_v14 = vpop.f32.mrf.mxu0 }
 0x31e   : > { %v955_v15 = vmul.f32 0.6931472, %v1645_v12  ;;  %1598 = vmatmul.mubr.msk.f32.gmra.mxu0 %vm324_vm1, %v964_v10 }
 0x31f   : > { %1600 = vmatprep.mubr.msk.f32.mxu0 %vm1661_vm0, %v1660_v1 }
 0x320   : > { %v965_v13 = vadd.f32 %v955_v15, %v1964_v19 }
 0x321   : > { %v1647_v17 = vpop.eup %1646 }
 0x322   : > { %v957_v18 = vmul.f32 0.6931472, %v1647_v17  ;;  %1601 = vmatmul.mubr.msk.f32.gmra.mxu0 %vm324_vm1, %v965_v13 }
 0x323   : > { %1603 = vmatprep.mubr.msk.f32.mxu0 %vm1661_vm0, %v1660_v1 }
 0x324   : > { %v966_v16 = vadd.f32 %v957_v18, %v1967_v22  ;;  %v1340_v22 = vld [vmem:[%s2081_s7] ss:$0 sm:$0xff] }
 0x325   : > { %v1649_v20 = vpop.eup %1648  ;;  %v1098_v26 = vadd.f32 %v1340_v22, %v2000_v40  ;;  %v1099_v30 = vadd.f32 %v1340_v22, %v2002_v44  ;;  %v1100_v35 = vadd.f32 %v1340_v22, %v2004_v47  ;;  %v1101_v29 = vadd.f32 %v1340_v22, %v2006_v49 }
 0x326   : > { %v959_v21 = vmul.f32 0.6931472, %v1649_v20  ;;  %1604 = vmatmul.mubr.msk.f32.gmra.mxu0 %vm324_vm1, %v966_v16  ;;  %v1102_v44 = vadd.f32 %v1340_v22, %v2008_v51  ;;  %v1103_v34 = vadd.f32 %v1340_v22, %v2010_v42  ;;  %v1104_v46 = vadd.f32 %v1340_v22, %v2012_v41 }
 0x327   : > { %1606 = vmatprep.mubr.msk.f32.mxu0 %vm1661_vm0, %v1660_v1 }
 0x328   : > { %v967_v23 = vadd.f32 %v959_v21, %v1974_v27 }
 0x329   : > { %v1651_v19 = vpop.eup %1650 }
 0x32a   : > { %v961_v24 = vmul.f32 0.6931472, %v1651_v19  ;;  %1607 = vmatmul.mubr.msk.f32.gmra.mxu0 %vm324_vm1, %v967_v23 }
 0x32b   : > { %1609 = vmatprep.mubr.msk.f32.mxu0 %vm1661_vm0, %v1660_v1 }
 0x32c   : > { %v968_v25 = vadd.f32 %v961_v24, %v1980_v32 }
 0x32e   : > { %1610 = vmatmul.mubr.msk.f32.gmra.mxu0 %vm324_vm1, %v968_v25 }
 0x3d6   : > { %v1193_v1 = vpop.f32.mrf.mxu0 }
 0x3d7   : > { %v1227_v27 = vsub.f32 %v1098_v26, %v1193_v1 }
 0x3d8   : > { %v1593_v28 = vpop.f32.mrf.mxu0 }
 0x3d9   : > { %1235 = vst.msk [vmem:[%s2049_s24] sm:$0xff] %vm1234_vm2, %v1227_v27 }
 0x3da   : > { %v1198_v31 = vpop.f32.mrf.mxu0 }
 0x3db   : > { %v1228_v32 = vsub.f32 %v1099_v30, %v1198_v31 }
 0x3dc   : > { %v1596_v33 = vpop.f32.mrf.mxu0 }
 0x3dd   : > { %1236 = vst.msk [vmem:[%s2049_s24 + $0x8] sm:$0xff] %vm1234_vm2, %v1228_v32 }
 0x3de   : > { %v1203_v36 = vpop.f32.mrf.mxu0 }
 0x3df   : > { %v1229_v37 = vsub.f32 %v1100_v35, %v1203_v36 }
 0x3e0   : > { %v1599_v38 = vpop.f32.mrf.mxu0 }
 0x3e1   : > { %1237 = vst.msk [vmem:[%s2049_s24 + $0x10] sm:$0xff] %vm1234_vm2, %v1229_v37 }
 0x3e2   : > { %v1208_v39 = vpop.f32.mrf.mxu0 }
 0x3e3   : > { %v1230_v40 = vsub.f32 %v1101_v29, %v1208_v39 }
 0x3e4   : > { %v1602_v43 = vpop.f32.mrf.mxu0 }
 0x3e5   : > { %1238 = vst.msk [vmem:[%s2049_s24 + $0x18] sm:$0xff] %vm1234_vm2, %v1230_v40 }
 0x3e6   : > { %v1213_v45 = vpop.f32.mrf.mxu0 }
 0x3e7   : > { %v1231_v47 = vsub.f32 %v1102_v44, %v1213_v45 }
 0x3e8   : > { %v1605_v48 = vpop.f32.mrf.mxu0 }
 0x3e9   : > { %1239 = vst.msk [vmem:[%s2049_s24 + $0x20] sm:$0xff] %vm1234_vm2, %v1231_v47 }
 0x3ea   : > { %v1218_v52 = vpop.f32.mrf.mxu0 }
 0x3eb   : > { %v1232_v49 = vsub.f32 %v1103_v34, %v1218_v52 }
 0x3ec   : > { %v1608_v53 = vpop.f32.mrf.mxu0 }
 0x3ed   : > { %1240 = vst.msk [vmem:[%s2049_s24 + $0x28] sm:$0xff] %vm1234_vm2, %v1232_v49 }
 0x3ee   : > { %v1223_v50 = vpop.f32.mrf.mxu0 }
 0x3ef   : > { %v1233_v54 = vsub.f32 %v1104_v46, %v1223_v50 }
 0x3f0   : > { %v1611_v55 = vpop.f32.mrf.mxu0 }
 0x3f1   : > { %1241 = vst.msk [vmem:[%s2049_s24 + $0x30] sm:$0xff] %vm1234_vm2, %v1233_v54 }
 0x3f2 PF: > { %s18_s27 = sadd.s32 1, %s1658_s27  }
 0x3f3   : > { %p15_p4 = scmp.ge.s32.totalorder %s18_s27, 4  }
 0x3f5   :  { %17 = sbr.rel (!%p15_p4) target bundleno = 1 (0x1), region = 82 }

</bundles_post_ra>
